<compile_context>
chip_gen: v5e
topology: v5e:2x2
jax: 0.10.0
libtpu: 0.0.40
codegen_flags: <defaults>
</compile_context>

<pallas_src>
import functools
import numpy as np
import jax
import jax.numpy as jnp
from jax.experimental import pallas as pl
from jax.experimental.pallas import tpu as pltpu


# ----------------- basis construction (deterministic parameter setup, plain numpy) -----------

def _hermite_poly(X, n):
    coeff = [0.0] * n + [1.0]
    return np.polynomial.hermite_e.hermeval(X, coeff)


def _onescale_grid_hermite_gaussian(size, scale, max_order=None):
    max_order = max_order or size - 1
    X = np.linspace(-(size // 2), size // 2, size)
    Y = np.linspace(-(size // 2), size // 2, size)
    order_y, order_x = np.indices([max_order + 1, max_order + 1])
    G = np.exp(-X ** 2 / (2 * scale ** 2)) / scale
    basis_x = np.stack([G * _hermite_poly(X / scale, n) for n in order_x.ravel()])
    basis_y = np.stack([G * _hermite_poly(Y / scale, n) for n in order_y.ravel()])
    return basis_x[:, :, None] * basis_y[:, None, :]


def steerable_A(size, scales, effective_size):
    max_order = effective_size - 1
    max_scale = max(scales)
    basis_tensors = []
    for scale in scales:
        size_before_pad = int(size * scale / max_scale) // 2 * 2 + 1
        b = _onescale_grid_hermite_gaussian(size_before_pad, scale, max_order)
        pad = (size - size_before_pad) // 2
        b = np.pad(b, ((0, 0), (pad, pad), (pad, pad)))
        basis_tensors.append(b)
    return np.stack(basis_tensors, 1)  # [num_funcs, num_scales, size, size]


def normalize_basis_by_min_scale(basis):
    norm = np.sqrt((basis ** 2).sum((2, 3), keepdims=True))[:, [0]]
    return basis / norm


# ------------------------------------ Pallas kernel ------------------------------------------

def _ses_conv_kernel(x_ref, w_ref, b_ref, o_ref, *, K, Wp, stride, n_cols):
    """One (batch, row-tile) step.

    x_ref : [1, 1, C, in_len]     row-flattened overlapping input tile (padded image rows)
    w_ref : [OCS, K*K*C]          folded filters (taps x channels as one MXU contraction)
    b_ref : [OCS, 1]              per-(out_channel, scale) bias (zeros if module has no bias)
    o_ref : [1, 1, OCS, n_cols]   full-padded-width output columns for this row tile
    """
    taps = []
    for kh in range(K):
        for kw in range(K):
            d0 = kh * Wp + kw                      # static per-tap offset into the flat rows
            if stride == 1:
                taps.append(x_ref[0, 0, :, d0:d0 + n_cols])
            else:
                taps.append(x_ref[0, 0, :, pl.ds(d0, n_cols, stride)])
    patches = jnp.concatenate(taps, axis=0)        # in-VMEM im2col: [K*K*C, n_cols]
    acc = jnp.dot(w_ref[...], patches, preferred_element_type=jnp.float32)
    acc = acc + b_ref[...]                         # fused bias epilogue (no extra HBM pass)
    o_ref[0, 0] = acc.astype(o_ref.dtype)


def ses_conv_z2_h(x, weight, basis, *, kernel_size, out_channels, in_channels,
                  num_scales, stride=1, padding=0, padding_mode='constant',
                  bias=None, tile_rows=None):
    """Forward pass of SESConv_Z2_H: [B, C, H, W] -> [B, OC, S, Ho, Wo] (groups=1)."""
    # TODO(synk): groups != 1 is not implemented (the PyTorch forward defaults to groups=1).
    K = kernel_size
    OC, IC, S = out_channels, in_channels, num_scales
    nf = basis.shape[0]
    T = K * K
    OCS = OC * S

    # --- kernel = weight @ basis (tiny parameter-setup matmul, plain JAX glue) ---
    kernel = weight.reshape(OC * IC, nf) @ basis.reshape(nf, -1)          # [OC*IC, S*K*K]
    kernel = kernel.reshape(OC, IC, S, K, K)
    kernel = jnp.transpose(kernel, (0, 2, 1, 3, 4)).reshape(OCS, IC, K, K)
    # folded, lane-dense weight layout for one big MXU contraction: [OCS, (kh*K+kw)*IC + c]
    w_fold = jnp.transpose(kernel, (0, 2, 3, 1)).reshape(OCS, T * IC)

    # --- padding (glue); 'constant' == zero pad as in F.pad ---
    if padding > 0:
        mode = {'constant': 'constant', 'replicate': 'edge',
                'reflect': 'reflect', 'circular': 'wrap'}[padding_mode]
        x = jnp.pad(x, ((0, 0), (0, 0), (padding, padding), (padding, padding)), mode=mode)

    B, C, Hp, Wp = x.shape
    Ho = (Hp - K) // stride + 1
    Wo = (Wp - K) // stride + 1

    # --- output-row tiling (the kernel computes full padded-width columns per output row;
    #     the Wp-Wo junk columns per row are discarded after the call) ---
    if tile_rows is None:
        tile_rows = max(1, min(Ho, 1024 // Wp))    # ~1K output lanes per grid step
    n_tiles = -(-Ho // tile_rows)                  # ceil
    n_cols = tile_rows * Wp
    in_len = (K - 1) * Wp + (K - 1) + stride * (n_cols - 1) + 1

    x_flat = x.reshape(B, C, Hp * Wp)
    needed = (n_tiles - 1) * tile_rows * stride * Wp + in_len
    if needed > Hp * Wp:
        x_flat = jnp.pad(x_flat, ((0, 0), (0, 0), (0, needed - Hp * Wp)))

    # overlapping row tiles: [B, n_tiles, C, in_len]  (only ~(tile_rows*stride+K)/(tile_rows*stride)
    # duplication of input HBM traffic instead of the K*K-fold blow-up of a full HBM im2col)
    row_tiles = [
        jax.lax.slice_in_dim(x_flat, r * tile_rows * stride * Wp,
                             r * tile_rows * stride * Wp + in_len, axis=2)
        for r in range(n_tiles)]
    x_tiles = jnp.stack(row_tiles, axis=1)

    bias_ocs = (jnp.repeat(bias, S) if bias is not None
                else jnp.zeros((OCS,), jnp.float32)).reshape(OCS, 1).astype(jnp.float32)

    kern = functools.partial(_ses_conv_kernel, K=K, Wp=Wp, stride=stride, n_cols=n_cols)

    itemsize = jnp.dtype(x.dtype).itemsize
    flops = 2 * B * n_tiles * OCS * T * C * n_cols
    bytes_accessed = int((x_tiles.size + w_fold.size + bias_ocs.size) * itemsize
                         + B * n_tiles * OCS * n_cols * itemsize)
    # per-step VMEM: double-buffered input + output blocks, resident weights, im2col patches
    step_bytes = 2 * (C * in_len + OCS * n_cols) * 4 + (OCS * T * C + T * C * n_cols) * 4
    vmem_limit = int(min(64 * 2 ** 20, max(16 * 2 ** 20, 4 * step_bytes)))

    out = pl.pallas_call(
        kern,
        out_shape=jax.ShapeDtypeStruct((B, n_tiles, OCS, n_cols), x.dtype),
        grid_spec=pltpu.PrefetchScalarGridSpec(
            num_scalar_prefetch=0,
            grid=(B, n_tiles),
            in_specs=[
                pl.BlockSpec((1, 1, C, in_len), lambda b, r: (b, r, 0, 0)),
                pl.BlockSpec((OCS, T * IC), lambda b, r: (0, 0)),
                pl.BlockSpec((OCS, 1), lambda b, r: (0, 0)),
            ],
            out_specs=pl.BlockSpec((1, 1, OCS, n_cols), lambda b, r: (b, r, 0, 0)),
        ),
        compiler_params=pltpu.CompilerParams(
            dimension_semantics=("parallel", "parallel"),
            vmem_limit_bytes=vmem_limit),
        cost_estimate=pl.CostEstimate(flops=flops, transcendentals=0,
                                      bytes_accessed=bytes_accessed),
    )(x_tiles, w_fold, bias_ocs)

    # drop junk (full-width) columns / padded rows and split OC*S -> (OC, S)
    y = jnp.transpose(out, (0, 2, 1, 3)).reshape(B, OCS, n_tiles * tile_rows, Wp)
    y = y[:, :, :Ho, :Wo].reshape(B, OC, S, Ho, Wo)
    return y


# ---------------------------------------- demo -----------------------------------------------

if __name__ == "__main__":
    key = jax.random.PRNGKey(0)
    B, IC, H, W = 2, 4, 16, 16
    OC, K, eff = 8, 5, 3
    scales = [round(s, 3) for s in (1.0, 1.5, 2.0)]
    S = len(scales)
    stride, padding = 1, 2

    basis = jnp.asarray(
        normalize_basis_by_min_scale(steerable_A(K, scales, eff)), dtype=jnp.float32)
    nf = basis.shape[0]  # effective_size ** 2

    xkey, wkey = jax.random.split(key)
    x = jax.random.normal(xkey, (B, IC, H, W), dtype=jnp.float32)
    # kaiming_uniform_(a=sqrt(5)) on weight [OC, IC, nf] -> bound = 1/sqrt(fan_in)
    bound = 1.0 / float(np.sqrt(IC * nf))
    weight = jax.random.uniform(wkey, (OC, IC, nf), minval=-bound, maxval=bound,
                                dtype=jnp.float32)

    # tile_rows=8 -> 2 row tiles per batch: exercises the spatial grid axis + row padding path
    y = ses_conv_z2_h(x, weight, basis, kernel_size=K, out_channels=OC,
                      in_channels=IC, num_scales=S, stride=stride,
                      padding=padding, padding_mode='constant', bias=None,
                      tile_rows=8)
    y = jax.block_until_ready(y)
    assert y.shape == (B, OC, S, H, W), y.shape

    # cross-check against XLA conv (same math as the PyTorch forward)
    kern = (weight.reshape(OC * IC, nf) @ basis.reshape(nf, -1)).reshape(OC, IC, S, K, K)
    kern = jnp.transpose(kern, (0, 2, 1, 3, 4)).reshape(OC * S, IC, K, K)
    xp = jnp.pad(x, ((0, 0), (0, 0), (padding, padding), (padding, padding)))
    y_ref = jax.lax.conv_general_dilated(
        xp, kern, (stride, stride), 'VALID',
        dimension_numbers=('NCHW', 'OIHW', 'NCHW'))
    y_ref = y_ref.reshape(B, OC, S, y_ref.shape[-2], y_ref.shape[-1])
    np.testing.assert_allclose(np.asarray(y), np.asarray(y_ref), rtol=2e-3, atol=2e-3)

    print("KERNEL_OK")
</pallas_src>

<mosaic_0001>
module attributes {stable_mosaic.version = 11 : i64} {
  func.func @_ses_conv_kernel(%arg0: i32, %arg1: i32, %arg2: memref<1x1x4x244xf32, #tpu.memory_space<vmem>>, %arg3: memref<24x100xf32, #tpu.memory_space<vmem>>, %arg4: memref<24x1xf32, #tpu.memory_space<vmem>>, %arg5: memref<1x1x24x160xf32, #tpu.memory_space<vmem>>) attributes {dimension_semantics = [#tpu.dimension_semantics<parallel>, #tpu.dimension_semantics<parallel>], iteration_bounds = array<i64: 2, 2>, scalar_prefetch = 0 : i64, scratch_operands = 0 : i64, tpu.core_type = #tpu.core_type<tc>, window_params = [{transform_indices = @transform_0, window_bounds = array<i64: 1, 1, 4, 244>}, {pipeline_mode = #tpu.pipeline_mode<synchronous>, transform_indices = @transform_1, window_bounds = array<i64: 24, 100>}, {pipeline_mode = #tpu.pipeline_mode<synchronous>, transform_indices = @transform_2, window_bounds = array<i64: 24, 1>}, {transform_indices = @transform_3, window_bounds = array<i64: 1, 1, 24, 160>}]} {
    %c0 = arith.constant 0 : index
    %c0_0 = arith.constant 0 : index
    %c0_1 = arith.constant 0 : index
    %c0_2 = arith.constant 0 : index
    %0 = vector.load %arg2[%c0, %c0_0, %c0_1, %c0_2] : memref<1x1x4x244xf32, #tpu.memory_space<vmem>>, vector<1x1x4x160xf32>
    %1 = vector.shape_cast %0 : vector<1x1x4x160xf32> to vector<4x160xf32>
    %c0_3 = arith.constant 0 : index
    %c0_4 = arith.constant 0 : index
    %c0_5 = arith.constant 0 : index
    %c1 = arith.constant 1 : index
    %2 = vector.load %arg2[%c0_3, %c0_4, %c0_5, %c1] : memref<1x1x4x244xf32, #tpu.memory_space<vmem>>, vector<1x1x4x160xf32>
    %3 = vector.shape_cast %2 : vector<1x1x4x160xf32> to vector<4x160xf32>
    %c0_6 = arith.constant 0 : index
    %c0_7 = arith.constant 0 : index
    %c0_8 = arith.constant 0 : index
    %c2 = arith.constant 2 : index
    %4 = vector.load %arg2[%c0_6, %c0_7, %c0_8, %c2] : memref<1x1x4x244xf32, #tpu.memory_space<vmem>>, vector<1x1x4x160xf32>
    %5 = vector.shape_cast %4 : vector<1x1x4x160xf32> to vector<4x160xf32>
    %c0_9 = arith.constant 0 : index
    %c0_10 = arith.constant 0 : index
    %c0_11 = arith.constant 0 : index
    %c3 = arith.constant 3 : index
    %6 = vector.load %arg2[%c0_9, %c0_10, %c0_11, %c3] : memref<1x1x4x244xf32, #tpu.memory_space<vmem>>, vector<1x1x4x160xf32>
    %7 = vector.shape_cast %6 : vector<1x1x4x160xf32> to vector<4x160xf32>
    %c0_12 = arith.constant 0 : index
    %c0_13 = arith.constant 0 : index
    %c0_14 = arith.constant 0 : index
    %c4 = arith.constant 4 : index
    %8 = vector.load %arg2[%c0_12, %c0_13, %c0_14, %c4] : memref<1x1x4x244xf32, #tpu.memory_space<vmem>>, vector<1x1x4x160xf32>
    %9 = vector.shape_cast %8 : vector<1x1x4x160xf32> to vector<4x160xf32>
    %c0_15 = arith.constant 0 : index
    %c0_16 = arith.constant 0 : index
    %c0_17 = arith.constant 0 : index
    %c20 = arith.constant 20 : index
    %10 = vector.load %arg2[%c0_15, %c0_16, %c0_17, %c20] : memref<1x1x4x244xf32, #tpu.memory_space<vmem>>, vector<1x1x4x160xf32>
    %11 = vector.shape_cast %10 : vector<1x1x4x160xf32> to vector<4x160xf32>
    %c0_18 = arith.constant 0 : index
    %c0_19 = arith.constant 0 : index
    %c0_20 = arith.constant 0 : index
    %c21 = arith.constant 21 : index
    %12 = vector.load %arg2[%c0_18, %c0_19, %c0_20, %c21] : memref<1x1x4x244xf32, #tpu.memory_space<vmem>>, vector<1x1x4x160xf32>
    %13 = vector.shape_cast %12 : vector<1x1x4x160xf32> to vector<4x160xf32>
    %c0_21 = arith.constant 0 : index
    %c0_22 = arith.constant 0 : index
    %c0_23 = arith.constant 0 : index
    %c22 = arith.constant 22 : index
    %14 = vector.load %arg2[%c0_21, %c0_22, %c0_23, %c22] : memref<1x1x4x244xf32, #tpu.memory_space<vmem>>, vector<1x1x4x160xf32>
    %15 = vector.shape_cast %14 : vector<1x1x4x160xf32> to vector<4x160xf32>
    %c0_24 = arith.constant 0 : index
    %c0_25 = arith.constant 0 : index
    %c0_26 = arith.constant 0 : index
    %c23 = arith.constant 23 : index
    %16 = vector.load %arg2[%c0_24, %c0_25, %c0_26, %c23] : memref<1x1x4x244xf32, #tpu.memory_space<vmem>>, vector<1x1x4x160xf32>
    %17 = vector.shape_cast %16 : vector<1x1x4x160xf32> to vector<4x160xf32>
    %c0_27 = arith.constant 0 : index
    %c0_28 = arith.constant 0 : index
    %c0_29 = arith.constant 0 : index
    %c24 = arith.constant 24 : index
    %18 = vector.load %arg2[%c0_27, %c0_28, %c0_29, %c24] : memref<1x1x4x244xf32, #tpu.memory_space<vmem>>, vector<1x1x4x160xf32>
    %19 = vector.shape_cast %18 : vector<1x1x4x160xf32> to vector<4x160xf32>
    %c0_30 = arith.constant 0 : index
    %c0_31 = arith.constant 0 : index
    %c0_32 = arith.constant 0 : index
    %c40 = arith.constant 40 : index
    %20 = vector.load %arg2[%c0_30, %c0_31, %c0_32, %c40] : memref<1x1x4x244xf32, #tpu.memory_space<vmem>>, vector<1x1x4x160xf32>
    %21 = vector.shape_cast %20 : vector<1x1x4x160xf32> to vector<4x160xf32>
    %c0_33 = arith.constant 0 : index
    %c0_34 = arith.constant 0 : index
    %c0_35 = arith.constant 0 : index
    %c41 = arith.constant 41 : index
    %22 = vector.load %arg2[%c0_33, %c0_34, %c0_35, %c41] : memref<1x1x4x244xf32, #tpu.memory_space<vmem>>, vector<1x1x4x160xf32>
    %23 = vector.shape_cast %22 : vector<1x1x4x160xf32> to vector<4x160xf32>
    %c0_36 = arith.constant 0 : index
    %c0_37 = arith.constant 0 : index
    %c0_38 = arith.constant 0 : index
    %c42 = arith.constant 42 : index
    %24 = vector.load %arg2[%c0_36, %c0_37, %c0_38, %c42] : memref<1x1x4x244xf32, #tpu.memory_space<vmem>>, vector<1x1x4x160xf32>
    %25 = vector.shape_cast %24 : vector<1x1x4x160xf32> to vector<4x160xf32>
    %c0_39 = arith.constant 0 : index
    %c0_40 = arith.constant 0 : index
    %c0_41 = arith.constant 0 : index
    %c43 = arith.constant 43 : index
    %26 = vector.load %arg2[%c0_39, %c0_40, %c0_41, %c43] : memref<1x1x4x244xf32, #tpu.memory_space<vmem>>, vector<1x1x4x160xf32>
    %27 = vector.shape_cast %26 : vector<1x1x4x160xf32> to vector<4x160xf32>
    %c0_42 = arith.constant 0 : index
    %c0_43 = arith.constant 0 : index
    %c0_44 = arith.constant 0 : index
    %c44 = arith.constant 44 : index
    %28 = vector.load %arg2[%c0_42, %c0_43, %c0_44, %c44] : memref<1x1x4x244xf32, #tpu.memory_space<vmem>>, vector<1x1x4x160xf32>
    %29 = vector.shape_cast %28 : vector<1x1x4x160xf32> to vector<4x160xf32>
    %c0_45 = arith.constant 0 : index
    %c0_46 = arith.constant 0 : index
    %c0_47 = arith.constant 0 : index
    %c60 = arith.constant 60 : index
    %30 = vector.load %arg2[%c0_45, %c0_46, %c0_47, %c60] : memref<1x1x4x244xf32, #tpu.memory_space<vmem>>, vector<1x1x4x160xf32>
    %31 = vector.shape_cast %30 : vector<1x1x4x160xf32> to vector<4x160xf32>
    %c0_48 = arith.constant 0 : index
    %c0_49 = arith.constant 0 : index
    %c0_50 = arith.constant 0 : index
    %c61 = arith.constant 61 : index
    %32 = vector.load %arg2[%c0_48, %c0_49, %c0_50, %c61] : memref<1x1x4x244xf32, #tpu.memory_space<vmem>>, vector<1x1x4x160xf32>
    %33 = vector.shape_cast %32 : vector<1x1x4x160xf32> to vector<4x160xf32>
    %c0_51 = arith.constant 0 : index
    %c0_52 = arith.constant 0 : index
    %c0_53 = arith.constant 0 : index
    %c62 = arith.constant 62 : index
    %34 = vector.load %arg2[%c0_51, %c0_52, %c0_53, %c62] : memref<1x1x4x244xf32, #tpu.memory_space<vmem>>, vector<1x1x4x160xf32>
    %35 = vector.shape_cast %34 : vector<1x1x4x160xf32> to vector<4x160xf32>
    %c0_54 = arith.constant 0 : index
    %c0_55 = arith.constant 0 : index
    %c0_56 = arith.constant 0 : index
    %c63 = arith.constant 63 : index
    %36 = vector.load %arg2[%c0_54, %c0_55, %c0_56, %c63] : memref<1x1x4x244xf32, #tpu.memory_space<vmem>>, vector<1x1x4x160xf32>
    %37 = vector.shape_cast %36 : vector<1x1x4x160xf32> to vector<4x160xf32>
    %c0_57 = arith.constant 0 : index
    %c0_58 = arith.constant 0 : index
    %c0_59 = arith.constant 0 : index
    %c64 = arith.constant 64 : index
    %38 = vector.load %arg2[%c0_57, %c0_58, %c0_59, %c64] : memref<1x1x4x244xf32, #tpu.memory_space<vmem>>, vector<1x1x4x160xf32>
    %39 = vector.shape_cast %38 : vector<1x1x4x160xf32> to vector<4x160xf32>
    %c0_60 = arith.constant 0 : index
    %c0_61 = arith.constant 0 : index
    %c0_62 = arith.constant 0 : index
    %c80 = arith.constant 80 : index
    %40 = vector.load %arg2[%c0_60, %c0_61, %c0_62, %c80] : memref<1x1x4x244xf32, #tpu.memory_space<vmem>>, vector<1x1x4x160xf32>
    %41 = vector.shape_cast %40 : vector<1x1x4x160xf32> to vector<4x160xf32>
    %c0_63 = arith.constant 0 : index
    %c0_64 = arith.constant 0 : index
    %c0_65 = arith.constant 0 : index
    %c81 = arith.constant 81 : index
    %42 = vector.load %arg2[%c0_63, %c0_64, %c0_65, %c81] : memref<1x1x4x244xf32, #tpu.memory_space<vmem>>, vector<1x1x4x160xf32>
    %43 = vector.shape_cast %42 : vector<1x1x4x160xf32> to vector<4x160xf32>
    %c0_66 = arith.constant 0 : index
    %c0_67 = arith.constant 0 : index
    %c0_68 = arith.constant 0 : index
    %c82 = arith.constant 82 : index
    %44 = vector.load %arg2[%c0_66, %c0_67, %c0_68, %c82] : memref<1x1x4x244xf32, #tpu.memory_space<vmem>>, vector<1x1x4x160xf32>
    %45 = vector.shape_cast %44 : vector<1x1x4x160xf32> to vector<4x160xf32>
    %c0_69 = arith.constant 0 : index
    %c0_70 = arith.constant 0 : index
    %c0_71 = arith.constant 0 : index
    %c83 = arith.constant 83 : index
    %46 = vector.load %arg2[%c0_69, %c0_70, %c0_71, %c83] : memref<1x1x4x244xf32, #tpu.memory_space<vmem>>, vector<1x1x4x160xf32>
    %47 = vector.shape_cast %46 : vector<1x1x4x160xf32> to vector<4x160xf32>
    %c0_72 = arith.constant 0 : index
    %c0_73 = arith.constant 0 : index
    %c0_74 = arith.constant 0 : index
    %c84 = arith.constant 84 : index
    %48 = vector.load %arg2[%c0_72, %c0_73, %c0_74, %c84] : memref<1x1x4x244xf32, #tpu.memory_space<vmem>>, vector<1x1x4x160xf32>
    %49 = vector.shape_cast %48 : vector<1x1x4x160xf32> to vector<4x160xf32>
    %50 = tpu.concatenate %1, %3, %5, %7, %9, %11, %13, %15, %17, %19, %21, %23, %25, %27, %29, %31 in 0 : vector<4x160xf32>, vector<4x160xf32>, vector<4x160xf32>, vector<4x160xf32>, vector<4x160xf32>, vector<4x160xf32>, vector<4x160xf32>, vector<4x160xf32>, vector<4x160xf32>, vector<4x160xf32>, vector<4x160xf32>, vector<4x160xf32>, vector<4x160xf32>, vector<4x160xf32>, vector<4x160xf32>, vector<4x160xf32> -> vector<64x160xf32>
    %51 = tpu.concatenate %33, %35, %37, %39, %41, %43, %45, %47, %49 in 0 : vector<4x160xf32>, vector<4x160xf32>, vector<4x160xf32>, vector<4x160xf32>, vector<4x160xf32>, vector<4x160xf32>, vector<4x160xf32>, vector<4x160xf32>, vector<4x160xf32> -> vector<36x160xf32>
    %52 = tpu.concatenate %50, %51 in 0 : vector<64x160xf32>, vector<36x160xf32> -> vector<100x160xf32>
    %c0_75 = arith.constant 0 : index
    %c0_76 = arith.constant 0 : index
    %53 = vector.load %arg3[%c0_75, %c0_76] : memref<24x100xf32, #tpu.memory_space<vmem>>, vector<24x100xf32>
    %cst = arith.constant dense<0.000000e+00> : vector<24x160xf32>
    %54 = tpu.matmul %53, %52, %cst {dimension_numbers = #tpu.dot_dimension_numbers<[1], [0], [0], [1], [0, 0, 1, 1], [], []>} : vector<24x100xf32>, vector<100x160xf32>, vector<24x160xf32> -> vector<24x160xf32>
    %c0_77 = arith.constant 0 : index
    %c0_78 = arith.constant 0 : index
    %55 = vector.load %arg4[%c0_77, %c0_78] : memref<24x1xf32, #tpu.memory_space<vmem>>, vector<24x1xf32>
    %56 = vector.broadcast %55 : vector<24x1xf32> to vector<24x160xf32>
    %57 = arith.addf %54, %56 : vector<24x160xf32>
    %c0_79 = arith.constant 0 : index
    %c0_80 = arith.constant 0 : index
    %c0_81 = arith.constant 0 : index
    %c0_82 = arith.constant 0 : index
    %58 = vector.load %arg5[%c0_79, %c0_80, %c0_81, %c0_82] : memref<1x1x24x160xf32, #tpu.memory_space<vmem>>, vector<1x1x24x160xf32>
    %59 = vector.shape_cast %58 : vector<1x1x24x160xf32> to vector<24x160xf32>
    %60 = vector.shape_cast %57 : vector<24x160xf32> to vector<1x1x24x160xf32>
    tpu.vector_store %arg5[%c0_79, %c0_80, %c0_81, %c0_82], %60 {strides = array<i32>} : memref<1x1x24x160xf32, #tpu.memory_space<vmem>>, vector<1x1x24x160xf32>,
    return
  }
  func.func @transform_0(%arg0: i32, %arg1: i32) -> (i32, i32, i32, i32) {
    %c0_i32 = arith.constant 0 : i32
    %c0_i32_0 = arith.constant 0 : i32
    %c0_i32_1 = arith.constant 0 : i32
    return %arg0, %arg1, %c0_i32, %c0_i32_0 : i32, i32, i32, i32
  }
  func.func @transform_1(%arg0: i32, %arg1: i32) -> (i32, i32) {
    %c0_i32 = arith.constant 0 : i32
    %c0_i32_0 = arith.constant 0 : i32
    %c0_i32_1 = arith.constant 0 : i32
    return %c0_i32, %c0_i32_0 : i32, i32
  }
  func.func @transform_2(%arg0: i32, %arg1: i32) -> (i32, i32) {
    %c0_i32 = arith.constant 0 : i32
    %c0_i32_0 = arith.constant 0 : i32
    %c0_i32_1 = arith.constant 0 : i32
    return %c0_i32, %c0_i32_0 : i32, i32
  }
  func.func @transform_3(%arg0: i32, %arg1: i32) -> (i32, i32, i32, i32) {
    %c0_i32 = arith.constant 0 : i32
    %c0_i32_0 = arith.constant 0 : i32
    %c0_i32_1 = arith.constant 0 : i32
    return %arg0, %arg1, %c0_i32, %c0_i32_0 : i32, i32, i32, i32
  }
}

</mosaic_0001>

<bundles_post_ra>
// kernel: tpu_custom_call.1
= control target key start
LH: loop header
LB: loop body
LE: loop exit
PB: predicated region body
PF: predicated region fallthrough
CT: control target
= control target key end

     0   :  { %8 = vsyncpa [#allocation3], 0  ;;  %s1590_s0 = inlined_call_operand.hbm [shape: f32[2,2,4,244], index: 0, kind: input, shape index: {}]   ;;  %s1591_s1 = inlined_call_operand.vmem [shape: f32[24,100], index: 1, kind: input, shape index: {}]   ;;  %s1592_s2 = inlined_call_operand.vmem [shape: f32[24,1], index: 2, kind: input, shape index: {}]   ;;  %s1593_s3 = inlined_call_operand.hbm [shape: f32[2,2,24,160], index: 3, kind: output, shape index: {}]  }
   0x1   :  { %10 = vsyncpa [#allocation3 + $0x1], 0 }
   0x2   :  { %11 = vsyncpa [#allocation4], 0 }
   0x3   :  { %13 = vsyncpa [#allocation4 + $0x1], 0  ;;  %s1195_s12 = smov 0   ;;  %s1197_s13 = smov 0  }
   0x4   :  { %s1199_s14 = smov 0   ;;  %s1201_s15 = smov 0  }
   0x5   :  { %s1203_s16 = smov 0   ;;  %s1205_s17 = smov 0  }
   0x6   :  { %s1207_s18 = smov 0   ;;  %s1209_s19 = smov 0  }
   0x7 LB: > { %s744_s20 = sadd.s32 4294967295, %s1153_s19   ;;  %s745_s21 = sadd.s32 4294967294, %s1153_s19   ;;  %s1153_s19 = sphi %s1209_s19, %s19_s19   ;;  %s1149_s18 = sphi %s1207_s18, %s1607_s18   ;;  %s1145_s17 = sphi %s1205_s17, %s1606_s17   ;;  %s1141_s16 = sphi %s1203_s16, %s1605_s16   ;;  %s1137_s15 = sphi %s1201_s15, %s1604_s15   ;;  %s1133_s14 = sphi %s1199_s14, %s1603_s14   ;;  %s1129_s13 = sphi %s1197_s13, %s1602_s13   ;;  %s1125_s12 = sphi %s1195_s12, %s1601_s12  }
   0x8   : > { %s28_s22 = sadd.s32 1, %s1145_s17  ;;  %s31_s23 = sadd.s32 1, %s1149_s18 }
   0x9   : > { %p29_p0 = scmp.ge.s32.totalorder %s28_s22, 2  ;;  %s40_s24 = sadd.s32 1, %s1133_s14 }
   0xa   : > { %p47_p1 = scmp.ne.s32.totalorder %s1133_s14, %s1129_s13  ;;  %p48_p2 = scmp.eq.s32.totalorder %s1153_s19, 0 }
   0xb   : > { %s1609_s22 = smov (%p29_p0, %s28_s22), 0  ;;  %s1611_s23 = smov (!%p29_p0, %s31_s23), %s1149_s18 }
   0xc   : > { %s36_s25 = ssub.s32 %s1145_s17, %s1609_s22  ;;  %p1248_p3 = por %p48_p2, %p47_p1 }
   0xd   : > { %p33_p4 = scmp.ge.s32.totalorder %s1611_s23, 2  ;;  %p53_p5 = scmp.ne.s32.totalorder %s1129_s13, %s1125_s12 }
   0xe   : > { %p54_p6 = scmp.eq.s32.totalorder %s744_s20, 0  ;;  %p121_p7 = scmp.eq.s32.totalorder %s744_s20, 3 }
   0xf   : > { %s1613_s23 = smov (%p33_p4, %s1611_s23), 0  ;;  %p127_p10 = scmp.eq.s32.totalorder %s745_s21, 3 }
  0x10   : > { %1596 = sst [smem:[#allocation8_spill]] %s1613_s23  ;;  %p1256_p8 = por %p54_p6, %p53_p5 }
  0x11   : > { %p1260_p9 = por %p121_p7, %p47_p1  ;;  %s35_s29 = ssub.s32 %s1149_s18, %s1613_s23 }
  0x12   : > { %s37_s30 = sor.u32 %s36_s25, %s35_s29  ;;  %p1266_p12 = por %p127_p10, %p53_p5 }
  0x13   : > { %p38_p11 = scmp.eq.s32.totalorder %s37_s30, 0  ;;  %p806_p13 = scmp.lt.s32.totalorder %s1153_s19, 4 }
  0x14   : > { %s153_s5 = sand.u32 1, %s1133_s14   ;;  %s749_s8 = sshll.u32 %s1145_s17, 1 }
  0x15   : > { %s1273_s6 = scalar_select %p38_p11, %s1133_s14, %s40_s24  }
  0x16   : > { %s748_s7 = sshll.u32 %s153_s5, 3  ;;  %s750_s9 = sshll.u32 %s1149_s18, 2 }
  0x17   : > { %s157_s10 = scalar_lea.vmem [#allocation2], %s748_s7  ;;  %s162_s20 = sadd.s32 %s750_s9, %s749_s8 }
  0x18   : > { %s168_s11 = sshll.u32 %s157_s10, 4  ;;  %s751_s21 = sshll.u32 %s162_s20, 2  ;;  %s169_s11 = int_to_ptr.vmem [resolvable:$true] %s168_s11 }
  0x19   : > { %p799_p0 = pnand %p806_p13, %p1248_p3  ;;  %s164_s30 = scalar_lea.hbm %s1590_s0, %s751_s21 }
  0x1a   : > { %p752_p1 = scmp.ge.s32.totalorder %s1153_s19, 1  ;;  %s166_s23 = sshll.u32 %s164_s30, 4  ;;  %s167_s23 = int_to_ptr.hbm [resolvable:$true] %s166_s23 }
  0x1b   : > { %p173_p2 = scmp.lt.s32.totalorder %s1153_s19, 5  ;;  %s154_s24 = scalar_lea.sflag [#allocation3], %s153_s5 }
  0x1c   : > { %801 = dma.hbm_to_vmem [thread:$0]  (!%p799_p0), %s167_s23, 128, %s169_s11, %s154_s24  }
  0x1d   : > { %p174_p4 = pnand %p752_p1, %p173_p2 }
  0x1e   : > { %s1285_s7 = sand.u32 (!%p174_p4), 1, %s1129_s13  }
  0x1f   : > { %177 = sbr.rel (%p174_p4) target bundleno = 676 (0x2a4), region = 32  ;;  %s753_s26 = sshll.u32 (!%p174_p4), %s1285_s7, 3 }
  0x20   : > { %s180_s8 = scalar_lea.sflag (!%p174_p4), [#allocation3], %s1285_s7  ;;  %s183_s9 = scalar_lea.vmem (!%p174_p4), [#allocation2], %s753_s26 }
  0x24   : > { %1116 = dma.done.wait (%p1256_p8), %s180_s8, 128  }
  0x25   : > { %1118 = vsyncadd (%p1256_p8), %s180_s8, 4294967168  ;;  %v1293_v0 = vld [vmem:[%s183_s9] sm:$0xff]  ;;  %s1155_s23 = smov 109   ;;  %s1156_s27 = smov 108   ;;  %vm448_vm0 = vcmask 891904   ;;  %vm268_vm1 = vcmask 883712  }
  0x26   : > { %209 = vst [vmem:[#allocation1] ss:$2 sm:$0xff] %v1293_v0  ;;  %s1157_s5 = smov 107   ;;  %s1158_s10 = smov 127   ;;  %vm222_vm2 = vcmask 1039360   ;;  %vm387_vm3 = vcmask 1043456  }
  0x27   : > { %s1159_s11 = smov 106   ;;  %s1160_s20 = smov 105   ;;  %vm279_vm4 = vcmask 875520   ;;  %vm291_vm5 = vcmask 867328   ;;  %vm302_vm6 = vcmask 859136   ;;  %vm245_vm7 = vcmask 1022976  }
  0x28   : > { %s1161_s21 = smov 125   ;;  %s1162_s25 = smov 126   ;;  %vm233_vm8 = vcmask 1031168   ;;  %vm528_vm9 = vcmask 547840   ;;  %vm371_vm10 = vcmask 687104   ;;  %vm383_vm11 = vcmask 556032  }
  0x29   : > { %s1163_s29 = smov 86   ;;  %s1164_s30 = smov 84   ;;  %vm348_vm12 = vcmask 703488   ;;  %vm360_vm13 = vcmask 695296   ;;  %vm325_vm14 = vcmask 719872   ;;  %vm337_vm15 = vcmask 711680  }
  0x2a   : > { %s1165_s24 = smov 87   ;;  %s1166_s26 = smov 85  }
  0x2b   : > { %s1167_s8 = smov 67   ;;  %s1168_s9 = smov 68  }
  0x2d   : > { %v1296_v1 = vld.sshfl [vmem:[#allocation1] sm:$0xff pattern:$0x75316420]  ;;  %v1298_v2 = vld.sshfl [vmem:[#allocation1 + $0x8] sm:$0xff pattern:$0x75316420] }
  0x2e   : > { %215 = vst [vmem:[#allocation1 + $0x1] ss:$2 sm:$0xff] %v1293_v0 }
  0x35   : > { %v1301_v3 = vld.sshfl [vmem:[#allocation1] sm:$0xff pattern:$0x75316420]  ;;  %v1303_v4 = vld.sshfl [vmem:[#allocation1 + $0x8] sm:$0xff pattern:$0x75316420] }
  0x36   : > { %226 = vst [vmem:[#allocation1] ss:$2 sm:$0xff] %v1293_v0 }
  0x3d   : > { %v1306_v5 = vld.sshfl [vmem:[#allocation1] sm:$0xff pattern:$0x75316420]  ;;  %v1308_v6 = vld.sshfl [vmem:[#allocation1 + $0x8] sm:$0xff pattern:$0x75316420] }
  0x3e   : > { %238 = vst [vmem:[#allocation1 + $0x1] ss:$2 sm:$0xff] %v1293_v0 }
  0x45   : > { %v1311_v7 = vld.sshfl [vmem:[#allocation1] sm:$0xff pattern:$0x75316420]  ;;  %v1313_v8 = vld.sshfl [vmem:[#allocation1 + $0x8] sm:$0xff pattern:$0x75316420] }
  0x46   : > { %249 = vst [vmem:[#allocation1] ss:$2 sm:$0xff] %v1293_v0 }
  0x4d   : > { %v1316_v9 = vld.sshfl [vmem:[#allocation1] sm:$0xff pattern:$0x75316420]  ;;  %v1318_v10 = vld.sshfl [vmem:[#allocation1 + $0x8] sm:$0xff pattern:$0x75316420] }
  0x4e   : > { %261 = vst [vmem:[#allocation1 + $0x1] ss:$2 sm:$0xff] %v1293_v0 }
  0x55   : > { %v1321_v11 = vld.sshfl [vmem:[#allocation1] sm:$0xff pattern:$0x75316420]  ;;  %v1323_v12 = vld.sshfl [vmem:[#allocation1 + $0x8] sm:$0xff pattern:$0x75316420] }
  0x56   : > { %272 = vst [vmem:[#allocation1] ss:$2 sm:$0xff] %v1293_v0 }
  0x5d   : > { %v1326_v13 = vld.sshfl [vmem:[#allocation1] sm:$0xff pattern:$0x75316420]  ;;  %v1328_v14 = vld.sshfl [vmem:[#allocation1 + $0x8] sm:$0xff pattern:$0x75316420] }
  0x5e   : > { %284 = vst [vmem:[#allocation1 + $0x1] ss:$2 sm:$0xff] %v1293_v0 }
  0x65   : > { %v1331_v15 = vld.sshfl [vmem:[#allocation1] sm:$0xff pattern:$0x75316420]  ;;  %v1333_v16 = vld.sshfl [vmem:[#allocation1 + $0x8] sm:$0xff pattern:$0x75316420] }
  0x66   : > { %295 = vst [vmem:[#allocation1] ss:$2 sm:$0xff] %v1293_v0 }
  0x6d   : > { %v1336_v17 = vld.sshfl [vmem:[#allocation1] sm:$0xff pattern:$0x75316420]  ;;  %v1338_v18 = vld.sshfl [vmem:[#allocation1 + $0x8] sm:$0xff pattern:$0x75316420] }
  0x6e   : > { %307 = vst [vmem:[#allocation1 + $0x1] ss:$2 sm:$0xff] %v1293_v0 }
  0x75   : > { %v1341_v19 = vld.sshfl [vmem:[#allocation1] sm:$0xff pattern:$0x75316420]  ;;  %v1343_v20 = vld.sshfl [vmem:[#allocation1 + $0x8] sm:$0xff pattern:$0x75316420] }
  0x76   : > { %318 = vst [vmem:[#allocation1] ss:$2 sm:$0xff] %v1293_v0 }
  0x7d   : > { %v1346_v21 = vld.sshfl [vmem:[#allocation1] sm:$0xff pattern:$0x75316420]  ;;  %v1348_v22 = vld.sshfl [vmem:[#allocation1 + $0x8] sm:$0xff pattern:$0x75316420] }
  0x7e   : > { %330 = vst [vmem:[#allocation1 + $0x1] ss:$2 sm:$0xff] %v1293_v0 }
  0x85   : > { %v1351_v23 = vld.sshfl [vmem:[#allocation1] sm:$0xff pattern:$0x75316420]  ;;  %v1353_v24 = vld.sshfl [vmem:[#allocation1 + $0x8] sm:$0xff pattern:$0x75316420] }
  0x86   : > { %341 = vst [vmem:[#allocation1] ss:$2 sm:$0xff] %v1293_v0  ;;  %v952_v60 = vpack.i.bf16 %v1353_v24, %v1351_v23 }
  0x8d   : > { %v1356_v25 = vld.sshfl [vmem:[#allocation1] sm:$0xff pattern:$0x75316420]  ;;  %v1358_v26 = vld.sshfl [vmem:[#allocation1 + $0x8] sm:$0xff pattern:$0x75316420] }
  0x8e   : > { %353 = vst [vmem:[#allocation1 + $0x1] ss:$2 sm:$0xff] %v1293_v0  ;;  %v937_v58 = vpack.i.bf16 %v1358_v26, %v1356_v25 }
  0x95   : > { %v1361_v27 = vld.sshfl [vmem:[#allocation1] sm:$0xff pattern:$0x75316420]  ;;  %v1363_v28 = vld.sshfl [vmem:[#allocation1 + $0x8] sm:$0xff pattern:$0x75316420] }
  0x96   : > { %364 = vst [vmem:[#allocation1] ss:$2 sm:$0xff] %v1293_v0  ;;  %v942_v63 = vpack.i.bf16 %v1363_v28, %v1361_v27 }
  0x9d   : > { %v365_v29 = vld.sshfl [vmem:[#allocation1] sm:$0xff pattern:$0x75316420]  ;;  %v366_v30 = vld.sshfl [vmem:[#allocation1 + $0x8] sm:$0xff pattern:$0x75316420] }
  0x9e   : > { %376 = vst [vmem:[#allocation1 + $0x1] ss:$2 sm:$0xff] %v1293_v0  ;;  %v927_v59 = vpack.i.bf16 %v366_v30, %v365_v29 }
  0xa5   : > { %v1367_v31 = vld.sshfl [vmem:[#allocation1] sm:$0xff pattern:$0x75316420]  ;;  %v1369_v32 = vld.sshfl [vmem:[#allocation1 + $0x8] sm:$0xff pattern:$0x75316420] }
  0xa6   : > { %404 = vst [vmem:[#allocation1] ss:$2 sm:$0xff] %v1293_v0 }
  0xad   : > { %v1372_v33 = vld.sshfl [vmem:[#allocation1] sm:$0xff pattern:$0x75316420]  ;;  %v1374_v34 = vld.sshfl [vmem:[#allocation1 + $0x8] sm:$0xff pattern:$0x75316420] }
  0xae   : > { %410 = vst [vmem:[#allocation1 + $0x1] ss:$2 sm:$0xff] %v1293_v0 }
  0xb5   : > { %v411_v35 = vld.sshfl [vmem:[#allocation1] sm:$0xff pattern:$0x75316420]  ;;  %v412_v36 = vld.sshfl [vmem:[#allocation1 + $0x8] sm:$0xff pattern:$0x75316420] }
  0xb6   : > { %420 = vst [vmem:[#allocation1] ss:$2 sm:$0xff] %v1293_v0  ;;  %v922_v47 = vpack.i.bf16 %v412_v36, %v411_v35 }
  0xbd   : > { %v421_v37 = vld.sshfl [vmem:[#allocation1] sm:$0xff pattern:$0x75316420]  ;;  %v422_v38 = vld.sshfl [vmem:[#allocation1 + $0x8] sm:$0xff pattern:$0x75316420] }
  0xbe   : > { %431 = vst [vmem:[#allocation1 + $0x1] ss:$2 sm:$0xff] %v1293_v0  ;;  %v912_v57 = vpack.i.bf16 %v422_v38, %v421_v37 }
  0xc5   : > { %v432_v39 = vld.sshfl [vmem:[#allocation1] sm:$0xff pattern:$0x75316420]  ;;  %v433_v40 = vld.sshfl [vmem:[#allocation1 + $0x8] sm:$0xff pattern:$0x75316420] }
  0xc6   : > { %441 = vst [vmem:[#allocation1] ss:$2 sm:$0xff] %v1293_v0  ;;  %v917_v54 = vpack.i.bf16 %v433_v40, %v432_v39 }
  0xcd   : > { %v442_v41 = vld.sshfl [vmem:[#allocation1] sm:$0xff pattern:$0x75316420]  ;;  %v443_v42 = vld.sshfl [vmem:[#allocation1 + $0x8] sm:$0xff pattern:$0x75316420] }
  0xce   : > { %453 = vst [vmem:[#allocation1 + $0x1] ss:$2 sm:$0xff] %v1293_v0  ;;  %v892_v43 = vpack.i.bf16 %v443_v42, %v442_v41  ;;  %v932_v42 = vpack.i.bf16 %v1369_v32, %v1367_v31 }
  0xd0   : > { %893 = vrot.lane.b32.xlu2 %v892_v43, %s1155_s23  ;;  %s1169_s23 = smov 88  }
  0xd5   : > { %v454_v44 = vld.sshfl [vmem:[#allocation1] sm:$0xff pattern:$0x75316420]  ;;  %v455_v45 = vld.sshfl [vmem:[#allocation1 + $0x8] sm:$0xff pattern:$0x75316420] }
  0xd6   : > { %463 = vst [vmem:[#allocation1] ss:$2 sm:$0xff] %v1293_v0  ;;  %v897_v46 = vpack.i.bf16 %v455_v45, %v454_v44 }
  0xd8   : > { %898 = vrot.lane.b32.xlu2 %v897_v46, %s1156_s27 }
  0xdd   : > { %v464_v48 = vld.sshfl [vmem:[#allocation1] sm:$0xff pattern:$0x75316420]  ;;  %v465_v49 = vld.sshfl [vmem:[#allocation1 + $0x8] sm:$0xff pattern:$0x75316420] }
  0xde   : > { %v902_v50 = vpack.i.bf16 %v465_v49, %v464_v48  ;;  %474 = vst [vmem:[#allocation1 + $0x1] ss:$2 sm:$0xff] %v1293_v0 }
  0xe0   : > { %903 = vrot.lane.b32.xlu1 %v902_v50, %s1157_s5  ;;  %923 = vrot.lane.b32.xlu2 %v922_v47, %s1158_s10 }
  0xe5   : > { %v475_v51 = vld.sshfl [vmem:[#allocation1] sm:$0xff pattern:$0x75316420]  ;;  %v476_v52 = vld.sshfl [vmem:[#allocation1 + $0x8] sm:$0xff pattern:$0x75316420] }
  0xe6   : > { %v907_v53 = vpack.i.bf16 %v476_v52, %v475_v51  ;;  %484 = vst [vmem:[#allocation1] ss:$2 sm:$0xff] %v1293_v0 }
  0xe8   : > { %908 = vrot.lane.b32.xlu1 %v907_v53, %s1159_s11  ;;  %938 = vrot.lane.b32.xlu2 %v937_v58, %s1163_s29 }
  0xed   : > { %v485_v55 = vld.sshfl [vmem:[#allocation1] sm:$0xff pattern:$0x75316420]  ;;  %v486_v56 = vld.sshfl [vmem:[#allocation1 + $0x8] sm:$0xff pattern:$0x75316420] }
  0xee   : > { %487 = vrot.lane.b32.xlu0 %v485_v55, %s1160_s20  ;;  %v977_v55 = vpack.i.bf16 %v1338_v18, %v1336_v17  ;;  %v987_v17 = vpack.i.bf16 %v1328_v14, %v1326_v13  ;;  %v1002_v18 = vpack.i.bf16 %v1323_v12, %v1321_v11  ;;  %v1017_v13 = vpack.i.bf16 %v1303_v4, %v1301_v3 }
  0xef   : > { %v997_v11 = vpack.i.bf16 %v1318_v10, %v1316_v9 }
  0xf0   : > { %918 = vrot.lane.b32.xlu1 %v917_v54, %s1161_s21  ;;  %953 = vrot.lane.b32.xlu2 %v952_v60, %s1165_s24  ;;  %s637_s24 = scalar_lea.sflag [#allocation4], %s1285_s7 }
  0xf6   : > { %489 = vrot.lane.b32.xlu0 %v486_v56, %s1160_s20 }
  0xf8   : > { %933 = vrot.lane.b32.xlu1 %v932_v42, %s1168_s9 }
  0xfe   : > { %913 = vrot.lane.b32.xlu0 %v912_v57, %s1162_s25 }
 0x106   : > { %928 = vrot.lane.b32.xlu0 %v927_v59, %s1164_s30 }
 0x10e   : > { %943 = vrot.lane.b32.xlu0 %v942_v63, %s1166_s26 }
 0x12a   : > { %v894_v61 = vpop.permute.xlu2 %893 }
 0x12b   : > { %v896_v0 = vunpack.i.h.bf16 %v894_v61  ;;  %v895_v35 = vunpack.i.l.bf16 %v894_v61 }
 0x12d   : > { %v449_v30 = vsel %vm448_vm0, %v895_v35, %v896_v0  ;;  %v1007_v35 = vpack.i.bf16 %v1308_v6, %v1306_v5  ;;  %v1012_v5 = vpack.i.bf16 %v1313_v8, %v1311_v7  ;;  %vm314_vm0 = vcmask 850944  }
 0x132   : > { %v899_v62 = vpop.permute.xlu2 %898 }
 0x133   : > { %v901_v25 = vunpack.i.h.bf16 %v899_v62  ;;  %v900_v26 = vunpack.i.l.bf16 %v899_v62 }
 0x135   : > { %v460_v36 = vsel %vm268_vm1, %v900_v26, %v901_v25  ;;  %v497_v40 = vsel %vm387_vm3, %v896_v0, %v901_v25  ;;  %v992_v0 = vpack.i.bf16 %v1333_v16, %v1331_v15  ;;  %v982_v15 = vpack.i.bf16 %v1343_v20, %v1341_v19 }
 0x136   : > { %v496_v39 = vsel %vm387_vm3, %v449_v30, %v460_v36 }
 0x137   : > { %v967_v41 = vpack.i.bf16 %v497_v40, %v496_v39 }
 0x139   : > { %968 = vrot.lane.b32.xlu0 %v967_v41, %s1167_s8 }
 0x13a   : > { %v924_v29 = vpop.permute.xlu2 %923 }
 0x13b   : > { %v926_v23 = vunpack.i.h.bf16 %v924_v29  ;;  %v925_v24 = vunpack.i.l.bf16 %v924_v29 }
 0x13d   : > { %v417_v37 = vsel %vm222_vm2, %v925_v24, %v926_v23  ;;  %v493_v27 = vsel %vm387_vm3, %v1374_v34, %v926_v23  ;;  %v947_v34 = vpack.i.bf16 %v1348_v22, %v1346_v21 }
 0x13e   : > { %v492_v28 = vsel %vm387_vm3, %v1372_v33, %v417_v37 }
 0x13f   : > { %v957_v38 = vpack.i.bf16 %v493_v27, %v492_v28  ;;  %948 = vrot.lane.b32.xlu1 %v947_v34, %s1169_s23 }
 0x141   : > { %958 = vrot.lane.b32.xlu2 %v957_v38, %s1167_s8 }
 0x142   : > { %v1452_v12 = vpop.permute.xlu2 %938 }
 0x143   : > { %v941_v39 = vunpack.i.h.bf16 %v1452_v12  ;;  %v940_v34 = vunpack.i.l.bf16 %v1452_v12 }
 0x14a   : > { %v1456_v3 = vpop.permute.xlu2 %953 }
 0x152   : > { %v904_v33 = vpop.permute.xlu1 %903 }
 0x153   : > { %v906_v43 = vunpack.i.h.bf16 %v904_v33  ;;  %v905_v44 = vunpack.i.l.bf16 %v904_v33 }
 0x155   : > { %v470_v46 = vsel %vm279_vm4, %v905_v44, %v906_v43 }
 0x15a   : > { %v909_v45 = vpop.permute.xlu1 %908 }
 0x15b   : > { %v911_v47 = vunpack.i.h.bf16 %v909_v45  ;;  %v910_v48 = vunpack.i.l.bf16 %v909_v45 }
 0x15d   : > { %v481_v31 = vsel %vm291_vm5, %v910_v48, %v911_v47  ;;  %v499_v32 = vsel %vm387_vm3, %v906_v43, %v911_v47 }
 0x15e   : > { %v498_v49 = vsel %vm387_vm3, %v470_v46, %v481_v31  ;;  %v956_v31 = vunpack.i.h.bf16 %v1456_v3 }
 0x15f   : > { %v972_v50 = vpack.i.bf16 %v499_v32, %v498_v49  ;;  %v955_v32 = vunpack.i.l.bf16 %v1456_v3 }
 0x160   : > { %v488_v21 = vpop.permute.xlu0 %487 }
 0x161   : > { %973 = vrot.lane.b32.xlu2 %v972_v50, %s1167_s8 }
 0x162   : > { %v919_v52 = vpop.permute.xlu1 %918 }
 0x163   : > { %v921_v53 = vunpack.i.h.bf16 %v919_v52  ;;  %v920_v54 = vunpack.i.l.bf16 %v919_v52 }
 0x165   : > { %v438_v57 = vsel %vm245_vm7, %v920_v54, %v921_v53 }
 0x168   : > { %v490_v22 = vpop.permute.xlu0 %489 }
 0x169   : > { %v491_v51 = vsel %vm302_vm6, %v488_v21, %v490_v22  ;;  %988 = vrot.lane.b32.xlu2 %v987_v17, %s1157_s5  ;;  %s1170_s5 = smov 104  }
 0x16a   : > { %524 = vrot.lane.b32.xlu0 %v491_v51, %s1167_s8  ;;  %v934_v4 = vpop.permute.xlu1 %933 }
 0x16b   : > { %v936_v27 = vunpack.i.h.bf16 %v934_v4  ;;  %v935_v28 = vunpack.i.l.bf16 %v934_v4 }
 0x16d   : > { %v384_v48 = vsel %vm383_vm11, %v935_v28, %v936_v27 }
 0x170   : > { %v914_v56 = vpop.permute.xlu0 %913 }
 0x171   : > { %v916_v58 = vunpack.i.h.bf16 %v914_v56  ;;  %v915_v59 = vunpack.i.l.bf16 %v914_v56  ;;  %1003 = vrot.lane.b32.xlu2 %v1002_v18, %s1156_s27  ;;  %s793_s27 = smul.u32 12, %s1141_s16 }
 0x172   : > { %978 = vrot.lane.b32.xlu0 %v977_v55, %s1160_s20  ;;  %v349_v55 = vsel %vm348_vm12, %v940_v34, %v941_v39 }
 0x173   : > { %v427_v60 = vsel %vm233_vm8, %v915_v59, %v916_v58  ;;  %v495_v61 = vsel %vm387_vm3, %v916_v58, %v921_v53 }
 0x174   : > { %v494_v62 = vsel %vm387_vm3, %v427_v60, %v438_v57 }
 0x175   : > { %v962_v63 = vpack.i.bf16 %v495_v61, %v494_v62 }
 0x177   : > { %963 = vrot.lane.b32.xlu1 %v962_v63, %s1167_s8 }
 0x178   : > { %v1450_v6 = vpop.permute.xlu0 %928 }
 0x179   : > { %1018 = vrot.lane.b32.xlu2 %v1017_v13, %s1158_s10  ;;  %v931_v29 = vunpack.i.h.bf16 %v1450_v6  ;;  %v930_v23 = vunpack.i.l.bf16 %v1450_v6 }
 0x17a   : > { %993 = vrot.lane.b32.xlu0 %v992_v0, %s1159_s11  ;;  %s1171_s11 = smov 124   ;;  %v338_v0 = vsel %vm337_vm15, %v955_v32, %v956_v31 }
 0x17b   : > { %v372_v47 = vsel %vm371_vm10, %v930_v23, %v931_v29  ;;  %v403_v51 = vsel %vm387_vm3, %v931_v29, %v936_v27 }
 0x17c   : > { %v402_v52 = vsel %vm387_vm3, %v372_v47, %v384_v48 }
 0x17f   : > { %526 = vrot.lane.b32.xlu1 %v490_v22, %s1167_s8 }
 0x180   : > { %v1454_v14 = vpop.permute.xlu0 %943 }
 0x181   : > { %v946_v44 = vunpack.i.h.bf16 %v1454_v14  ;;  %v945_v45 = vunpack.i.l.bf16 %v1454_v14 }
 0x182   : > { %1008 = vrot.lane.b32.xlu0 %v1007_v35, %s1162_s25 }
 0x183   : > { %v361_v56 = vsel %vm360_vm13, %v945_v45, %v946_v44  ;;  %v401_v62 = vsel %vm387_vm3, %v941_v39, %v946_v44  ;;  %v546_v39 = vld [vmem:[%s1592_s2 + $0x8] sm:$0xff] }
 0x184   : > { %v400_v13 = vsel %vm387_vm3, %v349_v55, %v361_v56 }
 0x187   : > { %983 = vrot.lane.b32.xlu1 %v982_v15, %s1170_s5  ;;  %s791_s5 = smul.u32 48, %s1285_s7 }
 0x189   : > { %s206_s20 = scalar_lea.vmem [#allocation5], %s791_s5  ;;  %s1075_s5 = scalar_lea.hbm %s1593_s3, 192 }
 0x18a   : > { %s651_s29 = sshll.u32 %s206_s20, 4  ;;  %s652_s29 = int_to_ptr.vmem [resolvable:$true] %s651_s29 }
 0x18f   : > { %998 = vrot.lane.b32.xlu1 %v997_v11, %s1171_s11  ;;  %s792_s11 = smul.u32 6, %s1137_s15 }
 0x191   : > { %s648_s10 = sadd.s32 %s793_s27, %s792_s11 }
 0x197   : > { %1013 = vrot.lane.b32.xlu1 %v1012_v5, %s1161_s21  ;;  %s762_s21 = sshll.u32 %s648_s10, 3 }
 0x198   : > { %s650_s25 = scalar_lea.hbm %s1593_s3, %s762_s21 }
 0x199   : > { %s653_s30 = sshll.u32 %s650_s25, 4  ;;  %s654_s30 = int_to_ptr.hbm [resolvable:$true] %s653_s30 }
 0x19a   : > { %s1069_s26 = sshra.s32 %s654_s30, 4  ;;  %s1070_s26 = int_to_ptr.hbm [resolvable:$true] %s1069_s26 }
 0x19b   : > { %v1458_v19 = vpop.permute.xlu2 %958  ;;  %s1071_s8 = scalar_lea.hbm %s1070_s26, 48  ;;  %p1076_p7 = scmp.lt.s32.totalorder %s1070_s26, %s1593_s3 }
 0x19c   : > { %v961_v33 = vunpack.i.h.bf16 %v1458_v19  ;;  %v960_v43 = vunpack.i.l.bf16 %v1458_v19  ;;  %p1072_p3 = scmp.ne.s32.totalorder %s1070_s26, %s1071_s8  ;;  %p1077_p8 = scmp.lt.s32.totalorder %s1075_s5, %s1071_s8 }
 0x19e   : > { %v529_v54 = vsel %vm528_vm9, %v960_v43, %v961_v33  ;;  %p1073_p5 = pnand %p1072_p3, %p1260_p9  ;;  %p1078_p10 = por %p1077_p8, %p1076_p7 }
 0x1a0   : > { %p1074_p6 = pneg %p1073_p5 }
 0x1a2   : > { %p1079_p11 = pnand %p1078_p10, %p1074_p6 }
 0x1ab   : > { %v969_v16 = vpop.permute.xlu0 %968 }
 0x1ac   : > { %v971_v24 = vunpack.i.h.bf16 %v969_v16  ;;  %v970_v37 = vunpack.i.l.bf16 %v969_v16 }
 0x1ae   : > { %v531_v46 = vsel %vm528_vm9, %v970_v37, %v971_v24 }
 0x1b1   : > { %v1460_v9 = vpop.permute.xlu1 %948 }
 0x1b2   : > { %v951_v49 = vunpack.i.h.bf16 %v1460_v9  ;;  %v950_v50 = vunpack.i.l.bf16 %v1460_v9 }
 0x1b4   : > { %v326_v63 = vsel %vm325_vm14, %v950_v50, %v951_v49  ;;  %v399_v6 = vsel %vm387_vm3, %v951_v49, %v956_v31  ;;  %v543_v49 = vld [vmem:[%s1591_s1 + $0x8] sm:$0xff] }
 0x1b5   : > { %v398_v3 = vsel %vm387_vm3, %v326_v63, %v338_v0 }
 0x1bb   : > { %v974_v20 = vpop.permute.xlu2 %973 }
 0x1bc   : > { %v976_v7 = vunpack.i.h.bf16 %v974_v20  ;;  %v975_v8 = vunpack.i.l.bf16 %v974_v20 }
 0x1be   : > { %v532_v42 = vsel %vm528_vm9, %v975_v8, %v976_v7 }
 0x1c3   : > { %v1466_v36 = vpop.permute.xlu2 %988 }
 0x1c4   : > { %v991_v17 = vunpack.i.h.bf16 %v1466_v36  ;;  %v990_v18 = vunpack.i.l.bf16 %v1466_v36 }
 0x1c6   : > { %v280_v19 = vsel %vm279_vm4, %v990_v18, %v991_v17 }
 0x1cb   : > { %v1004_v61 = vpop.permute.xlu2 %1003 }
 0x1cc   : > { %v1006_v11 = vunpack.i.h.bf16 %v1004_v61  ;;  %v1005_v5 = vunpack.i.l.bf16 %v1004_v61 }
 0x1d3   : > { %v1019_v29 = vpop.permute.xlu2 %1018 }
 0x1d4   : > { %v1021_v28 = vunpack.i.h.bf16 %v1019_v29 }
 0x1d6   : > { %v389_v48 = vsel %vm387_vm3, %v1298_v2, %v1021_v28  ;;  %v542_v2 = vld [vmem:[%s1591_s1] sm:$0xff] }
 0x1dc   : > { %v525_v10 = vpop.permute.xlu0 %524 }
 0x1e4   : > { %v1462_v26 = vpop.permute.xlu0 %978 }
 0x1e5   : > { %v981_v57 = vunpack.i.h.bf16 %v1462_v26  ;;  %v980_v58 = vunpack.i.l.bf16 %v1462_v26 }
 0x1e7   : > { %v303_v12 = vsel %vm302_vm6, %v980_v58, %v981_v57 }
 0x1e9   : > { %v964_v25 = vpop.permute.xlu1 %963 }
 0x1ea   : > { %v966_v40 = vunpack.i.h.bf16 %v964_v25  ;;  %v965_v41 = vunpack.i.l.bf16 %v964_v25 }
 0x1ec   : > { %v530_v21 = vsel %vm528_vm9, %v965_v41, %v966_v40  ;;  %v994_v53 = vpop.permute.xlu0 %993  ;;  %v1172_v41 = vmov 0  }
 0x1ed   : > { %v996_v35 = vunpack.i.h.bf16 %v994_v53  ;;  %v995_v15 = vunpack.i.l.bf16 %v994_v53  ;;  %1023 = vset.pattern.permute.xlu1 %v1172_v41  ;;  %1022 = vset.pattern.permute.xlu0 %v1172_v41 }
 0x1ee   : > { %555 = vperm.xlu1 %1023, %v546_v39   ;;  %1024 = vset.pattern.permute.xlu2 %v1172_v41 }
 0x1ef   : > { %v292_v9 = vsel %vm291_vm5, %v995_v15, %v996_v35  ;;  %v395_v8 = vsel %vm387_vm3, %v991_v17, %v996_v35 }
 0x1f0   : > { %v394_v23 = vsel %vm387_vm3, %v280_v19, %v292_v9 }
 0x1f1   : > { %v527_v30 = vpop.permute.xlu1 %526 }
 0x1f2   : > { %758 = vmatpush.msk.msra.mxu1 %vm387_vm3, %v527_v30  ;;  %778 = vmatpush.msk.msra.mxu3 %vm387_vm3, %v527_v30  ;;  %v533_v38 = vsel %vm528_vm9, %v525_v10, %v527_v30  ;;  %vm256_vm9 = vcmask 1014784  }
 0x1f3   : > { %754 = vmatpush.msk.msra.mxu0 %vm387_vm3, %v533_v38  ;;  %765 = vmatpush.msk.msra.mxu2 %vm387_vm3, %v533_v38  ;;  %v1020_v38 = vunpack.i.l.bf16 %v1019_v29 }
 0x1f4   : > { %607 = vmatpush.msra.mxu1 %v976_v7  ;;  %779 = vmatpush.msra.mxu3 %v976_v7  ;;  %v269_v7 = vsel %vm268_vm1, %v1005_v5, %v1006_v11  ;;  %v1009_v26 = vpop.permute.xlu0 %1008  ;;  %vm563_vm1 = vcmask 818176  }
 0x1f5   : > { %581 = vmatpush.msra.mxu0 %v532_v42  ;;  %766 = vmatpush.msra.mxu2 %v532_v42  ;;  %v1011_v37 = vunpack.i.h.bf16 %v1009_v26  ;;  %v1010_v27 = vunpack.i.l.bf16 %v1009_v26  ;;  %v547_v42 = vld [vmem:[%s1592_s2 + $0x10] sm:$0xff]  ;;  %v223_v45 = vsel %vm222_vm2, %v1020_v38, %v1021_v28  ;;  %vm630_vm2 = vcmask 261120  }
 0x1f6   : > { %608 = vmatpush.msra.mxu1 %v971_v24  ;;  %780 = vmatpush.msra.mxu3 %v971_v24  ;;  %v388_v32 = vsel %vm387_vm3, %v1296_v1, %v223_v45  ;;  %v544_v1 = vld [vmem:[%s1591_s1 + $0x10] sm:$0xff] }
 0x1f7   : > { %582 = vmatpush.msra.mxu0 %v531_v46  ;;  %767 = vmatpush.msra.mxu2 %v531_v46  ;;  %v234_v44 = vsel %vm233_vm8, %v1010_v27, %v1011_v37 }
 0x1f8   : > { %609 = vmatpush.msra.mxu1 %v966_v40  ;;  %781 = vmatpush.msra.mxu3 %v966_v40  ;;  %v545_v40 = vld [vmem:[%s1592_s2] sm:$0xff] }
 0x1f9   : > { %v984_v22 = vpop.permute.xlu1 %983  ;;  %583 = vmatpush.msra.mxu0 %v530_v21  ;;  %768 = vmatpush.msra.mxu2 %v530_v21 }
 0x1fa   : > { %610 = vmatpush.msra.mxu1 %v961_v33  ;;  %782 = vmatpush.msra.mxu3 %v961_v33  ;;  %v986_v59 = vunpack.i.h.bf16 %v984_v22  ;;  %v985_v60 = vunpack.i.l.bf16 %v984_v22 }
 0x1fb   : > { %584 = vmatpush.msra.mxu0 %v529_v54  ;;  %769 = vmatpush.msra.mxu2 %v529_v54 }
 0x1fc   : > { %611 = vmatpush.msra.mxu1 %v403_v51  ;;  %783 = vmatpush.msra.mxu3 %v403_v51  ;;  %v315_v14 = vsel %vm314_vm0, %v985_v60, %v986_v59  ;;  %v397_v16 = vsel %vm387_vm3, %v981_v57, %v986_v59 }
 0x1fd   : > { %585 = vmatpush.msra.mxu0 %v402_v52  ;;  %770 = vmatpush.msra.mxu2 %v402_v52  ;;  %v396_v25 = vsel %vm387_vm3, %v303_v12, %v315_v14 }
 0x1fe   : > { %612 = vmatpush.msra.mxu1 %v401_v62  ;;  %784 = vmatpush.msra.mxu3 %v401_v62 }
 0x1ff   : > { %586 = vmatpush.msra.mxu0 %v400_v13  ;;  %771 = vmatpush.msra.mxu2 %v400_v13 }
 0x200   : > { %613 = vmatpush.msra.mxu1 %v399_v6  ;;  %785 = vmatpush.msra.mxu3 %v399_v6 }
 0x201   : > { %v999_v4 = vpop.permute.xlu1 %998  ;;  %587 = vmatpush.msra.mxu0 %v398_v3  ;;  %772 = vmatpush.msra.mxu2 %v398_v3 }
 0x202   : > { %v1001_v10 = vunpack.i.h.bf16 %v999_v4  ;;  %v1000_v20 = vunpack.i.l.bf16 %v999_v4  ;;  %614 = vmatpush.msra.mxu1 %v397_v16  ;;  %786 = vmatpush.msra.mxu3 %v397_v16 }
 0x203   : > { %588 = vmatpush.msra.mxu0 %v396_v25  ;;  %773 = vmatpush.msra.mxu2 %v396_v25 }
 0x204   : > { %615 = vmatpush.msra.mxu1 %v395_v8  ;;  %787 = vmatpush.msra.mxu3 %v395_v8  ;;  %v393_v24 = vsel %vm387_vm3, %v1001_v10, %v1006_v11  ;;  %v257_v30 = vsel %vm256_vm9, %v1000_v20, %v1001_v10 }
 0x205   : > { %589 = vmatpush.msra.mxu0 %v394_v23  ;;  %774 = vmatpush.msra.mxu2 %v394_v23  ;;  %v392_v36 = vsel %vm387_vm3, %v257_v30, %v269_v7 }
 0x206   : > { %616 = vmatpush.msra.mxu1 %v393_v24  ;;  %788 = vmatpush.msra.mxu3 %v393_v24 }
 0x207   : > { %590 = vmatpush.msra.mxu0 %v392_v36  ;;  %775 = vmatpush.msra.mxu2 %v392_v36 }
 0x208   : > { %550 = vperm.xlu0 %1022, %v545_v40   ;;  %560 = vperm.xlu2 %1024, %v547_v42  }
 0x209   : > { %v1014_v34 = vpop.permute.xlu1 %1013 }
 0x20a   : > { %v1016_v33 = vunpack.i.h.bf16 %v1014_v34  ;;  %v1015_v43 = vunpack.i.l.bf16 %v1014_v34 }
 0x20c   : > { %v391_v46 = vsel %vm387_vm3, %v1011_v37, %v1016_v33  ;;  %v246_v47 = vsel %vm245_vm7, %v1015_v43, %v1016_v33 }
 0x20d   : > { %617 = vmatpush.msra.mxu1 %v391_v46  ;;  %789 = vmatpush.msra.mxu3 %v391_v46  ;;  %v390_v31 = vsel %vm387_vm3, %v234_v44, %v246_v47 }
 0x20e   : > { %591 = vmatpush.msra.mxu0 %v390_v31  ;;  %776 = vmatpush.msra.mxu2 %v390_v31 }
 0x20f   : > { %618 = vmatpush.msra.mxu1 %v389_v48  ;;  %790 = vmatpush.msra.mxu3 %v389_v48 }
 0x210   : > { %592 = vmatpush.msra.mxu0 %v388_v32  ;;  %777 = vmatpush.msra.mxu2 %v388_v32 }
 0x211   : > { %756 = vmatmul.msk.f32.vlgmr.msra.gmra.mxu2 %vm563_vm1, %v543_v49  ;;  %760 = vmatmul.msk.f32.vlgmr.msra.gmra.mxu3 %vm563_vm1, %v543_v49 }
 0x212   : > { %755 = vmatmul.msk.f32.vlgmr.msra.gmra.mxu0 %vm563_vm1, %v542_v2  ;;  %759 = vmatmul.msk.f32.vlgmr.msra.gmra.mxu1 %vm563_vm1, %v542_v2 }
 0x219   : > { %757 = vmatmul.msk.f32.gmra.mxu2 %vm563_vm1, %v544_v1  ;;  %761 = vmatmul.msk.f32.gmra.mxu3 %vm563_vm1, %v544_v1 }
 0x260   : > { %v556_v53 = vpop.permute.xlu1 %555 }
 0x262   : > { %v561_v58 = vpop.permute.xlu2 %560 }
 0x27a   : > { %v551_v50 = vpop.permute.xlu0 %550 }
 0x28f   : > { %v594_v21 = vpop.f32.mrf.mxu0  ;;  %v620_v22 = vpop.f32.mrf.mxu1 }
 0x290   : > { %v595_v51 = vadd.f32 %v594_v21, %v551_v50  ;;  %v621_v52 = vadd.f32 %v620_v22, %v551_v50 }
 0x292   : > { %629 = vst [vmem:[%s206_s20] sm:$0xff] %v595_v51 }
 0x293   : > { %631 = vst.msk [vmem:[%s206_s20 + $0x8] sm:$0xff] %vm630_vm2, %v621_v52 }
 0x294   : > { %v597_v54 = vpop.f32.mrf.mxu2  ;;  %v623_v55 = vpop.f32.mrf.mxu3 }
 0x295   : > { %v598_v56 = vadd.f32 %v597_v54, %v556_v53  ;;  %v624_v57 = vadd.f32 %v623_v55, %v556_v53 }
 0x297   : > { %632 = vst [vmem:[%s206_s20 + $0x10] sm:$0xff] %v598_v56 }
 0x298   : > { %633 = vst.msk [vmem:[%s206_s20 + $0x18] sm:$0xff] %vm630_vm2, %v624_v57 }
 0x29c   : > { %v600_v59 = vpop.f32.mrf.mxu2  ;;  %v626_v60 = vpop.f32.mrf.mxu3 }
 0x29d   : > { %v601_v61 = vadd.f32 %v600_v59, %v561_v58  ;;  %v627_v62 = vadd.f32 %v626_v60, %v561_v58 }
 0x29f   : > { %634 = vst [vmem:[%s206_s20 + $0x20] sm:$0xff] %v601_v61 }
 0x2a0   : > { %635 = vst.msk [vmem:[%s206_s20 + $0x28] sm:$0xff] %vm630_vm2, %v627_v62 }
 0x2a1   : > { %1082 = shalt.err (!%p1079_p11)
}
 0x2a2   : > { %s1173_s7 = smov 256   ;;  %s1174_s10 = smov 16  }
 0x2a3   : > { %796 = dma.vmem_to_hbm [thread:$0]  (%p1260_p9), %s652_s29, 768, %s654_s30, %s637_s24, %s1173_s7, %s1173_s7, %s1174_s10  }
 0x2a4 PF: > { %p807_p13 = scmp.ge.s32.totalorder %s1153_s19, 2  ;;  %s668_s20 = sand.u32 1, %s1125_s12  }
 0x2a5   : > { %s669_s21 = scalar_lea.sflag [#allocation4], %s668_s20 }
 0x2a6   : > { %p803_p0 = pnand %p807_p13, %p1266_p12 }
 0x2a8   : > { %p804_p1 = pneg %p803_p0 }
 0x2aa   : > { %1120 = dma.done.wait (%p804_p1), %s669_s21, 768  }
 0x2ab   : > { %1122 = vsyncadd (%p804_p1), %s669_s21, 4294966528  ;;  %s19_s19 = sadd.s32 1, %s1153_s19   ;;  %s1600_s28 = sld [smem:[#allocation8_spill]] }
 0x2ac   : > { %p16_p2 = scmp.ge.s32.totalorder %s19_s19, 6   ;;  %s1601_s12 = smov %s1129_s13 }
 0x2ad   : > { %s1602_s13 = smov %s1133_s14  ;;  %s1603_s14 = smov %s1273_s6 }
 0x2ae   : > { %s1604_s15 = smov %s1145_s17  ;;  %s1605_s16 = smov %s1149_s18 }
 0x2af   : > { %s1606_s17 = smov %s1609_s22  ;;  %18 = sbr.rel (!%p16_p2) target bundleno = 7 (0x7), region = 89 }
 0x2b1   : > { %s1607_s18 = smov %s1600_s28 }
 0x2b4   :  { %675 = vsyncpa [#allocation3], 1 }
 0x2b5   :  { %677 = vsyncpa [#allocation3 + $0x1], 1 }
 0x2b6   :  { %678 = vsyncpa [#allocation4], 1 }
 0x2b7   :  { %680 = vsyncpa [#allocation4 + $0x1], 1 }

</bundles_post_ra>
